<compile_context>
chip_gen: v6e
topology: v6e:2x2x1
jax: 0.10.0
libtpu: 0.0.40
codegen_flags: <defaults>
</compile_context>

<pallas_src>
import math

import jax
import jax.numpy as jnp
import numpy as np
from jax import lax
from jax.experimental import pallas as pl
from jax.experimental.pallas import tpu as pltpu


ATTN_TILE = 128  # q/k tile size; sequence length is padded to a multiple of this


def _pick_tile(n, pref, align):
    """Largest t <= pref with t % align == 0 and n % t == 0; else n (full)."""
    if n <= pref:
        return n
    t = (pref // align) * align
    while t >= align:
        if n % t == 0:
            return t
        t -= align
    return n


# ----------------------------------------------------------------------------
# Tiled linear (x @ W + b) kernel -- used for both qkv and proj projections.
# Weights arrive pre-cast to bf16; accumulation is f32 on the MXU.
# ----------------------------------------------------------------------------
def _linear_kernel(x_ref, w_ref, b_ref, o_ref):
    x = x_ref[...].astype(jnp.bfloat16)
    acc = jnp.dot(x, w_ref[...], preferred_element_type=jnp.float32)
    o_ref[...] = (acc + b_ref[...]).astype(o_ref.dtype)


def pallas_linear(x, w_bf16, b_f32, out_dtype):
    S, Din = x.shape
    Dout = w_bf16.shape[1]
    tm = _pick_tile(S, 256, 8)
    tn = _pick_tile(Dout, 512, 128)
    # N tiles outer, M tiles inner -> weight tile stays resident across the
    # inner M sweep; x / out tiles pipeline.
    grid = (Dout // tn, S // tm)
    flops = 2 * S * Din * Dout
    bytes_accessed = int(x.dtype.itemsize * S * Din + 2 * Din * Dout + 4 * Dout
                         + jnp.dtype(out_dtype).itemsize * S * Dout)
    return pl.pallas_call(
        _linear_kernel,
        out_shape=jax.ShapeDtypeStruct((S, Dout), out_dtype),
        grid=grid,
        in_specs=[
            pl.BlockSpec((tm, Din), lambda j, i: (i, 0)),
            pl.BlockSpec((Din, tn), lambda j, i: (0, j)),
            pl.BlockSpec((1, tn), lambda j, i: (0, j)),
        ],
        out_specs=pl.BlockSpec((tm, tn), lambda j, i: (i, j)),
        compiler_params=pltpu.CompilerParams(
            dimension_semantics=("parallel", "parallel")),
        cost_estimate=pl.CostEstimate(
            flops=flops, transcendentals=0, bytes_accessed=bytes_accessed),
    )(x, w_bf16, b_f32.reshape(1, Dout))


# ----------------------------------------------------------------------------
# Flash-style varlen attention kernel (heads batched per grid step).
#   grid = (num_q_tiles, num_k_tiles); ki is the online-softmax reduction axis.
#   Q/K arrive pre-RoPE'd / pre-scaled in bf16.  Scalar-prefetched per-q-tile
#   k-block ranges [kstart, kend] implement block-diagonal tile skipping.
# ----------------------------------------------------------------------------
def _flash_attn_kernel(kstart_ref, kend_ref,
                       q_ref, k_ref, v_ref, segq_ref, segk_ref,
                       o_ref, m_ref, l_ref, acc_ref):
    qi = pl.program_id(0)
    ki = pl.program_id(1)

    @pl.when(ki == 0)
    def _():
        m_ref[...] = jnp.full(m_ref.shape, -jnp.inf, jnp.float32)
        l_ref[...] = jnp.zeros(l_ref.shape, jnp.float32)
        acc_ref[...] = jnp.zeros(acc_ref.shape, jnp.float32)

    # Only k-tiles whose segment range intersects this q-tile's do any work;
    # the (nh, tq, tk) exp is the EUP-bound critical path on v6e/v7x.
    @pl.when((ki >= kstart_ref[qi]) & (ki <= kend_ref[qi]))
    def _():
        # scores: contract head_dim, batch over heads; inputs already bf16.
        s = lax.dot_general(
            q_ref[...], k_ref[...],
            dimension_numbers=(((2,), (2,)), ((0,), (0,))),
            preferred_element_type=jnp.float32)              # (nh, tq, tk)

        # block-diagonal (varlen) mask from segment ids.
        same_seg = segq_ref[...] == segk_ref[...]            # (tq,1)==(1,tk)
        s = jnp.where(same_seg[None], s, -1e30)

        m_prev = m_ref[...]
        m_new = jnp.maximum(m_prev, jnp.max(s, axis=-1, keepdims=True))
        alpha = jnp.exp(m_prev - m_new)
        p = jnp.exp(s - m_new)
        l_ref[...] = alpha * l_ref[...] + jnp.sum(p, axis=-1, keepdims=True)
        pv = lax.dot_general(
            p.astype(jnp.bfloat16), v_ref[...],
            dimension_numbers=(((2,), (1,)), ((0,), (0,))),
            preferred_element_type=jnp.float32)              # (nh, tq, hd)
        acc_ref[...] = alpha * acc_ref[...] + pv
        m_ref[...] = m_new

    @pl.when(ki == pl.num_programs(1) - 1)
    def _():
        inv_l = pl.reciprocal(l_ref[...], approx=True)
        o_ref[...] = (acc_ref[...] * inv_l).astype(o_ref.dtype)


def pallas_varlen_attention(kstart, kend, q, k, v, seg_row, seg_col):
    """q, k, v: (num_heads, S_pad, head_dim) bf16 (RoPE/scale already applied).
    kstart/kend: (num_q_tiles,) int32 k-block ranges.  seg_row: (S_pad,1) int32,
    seg_col: (1,S_pad) int32.  Returns (num_heads, S_pad, head_dim) bf16."""
    nh, S_pad, hd = q.shape
    tq = tk = ATTN_TILE
    n_q = S_pad // tq
    n_k = S_pad // tk

    def kv_block(qi, ki, ks, ke):
        # Clamp into the useful range: skipped steps re-use the previous block
        # index, so their K/V DMAs are elided as well.
        kb = jnp.minimum(jnp.maximum(ki, ks[qi]), ke[qi])
        return (0, kb, 0)

    def segk_block(qi, ki, ks, ke):
        kb = jnp.minimum(jnp.maximum(ki, ks[qi]), ke[qi])
        return (0, kb)

    flops = 4 * nh * S_pad * S_pad * hd
    bytes_accessed = int(2 * 4 * nh * S_pad * hd + 4 * 2 * S_pad)
    grid_spec = pltpu.PrefetchScalarGridSpec(
        num_scalar_prefetch=2,
        grid=(n_q, n_k),
        in_specs=[
            pl.BlockSpec((nh, tq, hd), lambda qi, ki, ks, ke: (0, qi, 0)),  # q
            pl.BlockSpec((nh, tk, hd), kv_block),                           # k
            pl.BlockSpec((nh, tk, hd), kv_block),                           # v
            pl.BlockSpec((tq, 1), lambda qi, ki, ks, ke: (qi, 0)),          # seg_row
            pl.BlockSpec((1, tk), segk_block),                              # seg_col
        ],
        out_specs=pl.BlockSpec((nh, tq, hd), lambda qi, ki, ks, ke: (0, qi, 0)),
        scratch_shapes=[
            pltpu.VMEM((nh, tq, 1), jnp.float32),   # m (running max)
            pltpu.VMEM((nh, tq, 1), jnp.float32),   # l (running denom)
            pltpu.VMEM((nh, tq, hd), jnp.float32),  # acc
        ],
    )
    return pl.pallas_call(
        _flash_attn_kernel,
        out_shape=jax.ShapeDtypeStruct((nh, S_pad, hd), q.dtype),
        grid_spec=grid_spec,
        compiler_params=pltpu.CompilerParams(
            dimension_semantics=("parallel", "arbitrary")),
        cost_estimate=pl.CostEstimate(
            flops=flops, transcendentals=nh * S_pad * S_pad,
            bytes_accessed=bytes_accessed),
    )(kstart, kend, q, k, v, seg_row, seg_col)


# ----------------------------------------------------------------------------
# Module wrapper (parameter holder + forward)
# ----------------------------------------------------------------------------
class Qwen25VLVisionSdpaAttentionPallas:
    def __init__(self, dim: int, num_heads: int, key):
        assert dim % num_heads == 0
        self.dim = dim
        self.num_heads = num_heads
        self.head_dim = dim // num_heads
        k1, k2, k3, k4 = jax.random.split(key, 4)
        # f32 masters (used by the reference), weights stored input-major.
        self.qkv_w = jax.random.normal(k1, (dim, 3 * dim), jnp.float32) * 0.02
        self.qkv_b = jax.random.normal(k2, (3 * dim,), jnp.float32) * 0.02
        self.proj_w = jax.random.normal(k3, (dim, dim), jnp.float32) * 0.02
        self.proj_b = jax.random.normal(k4, (dim,), jnp.float32) * 0.02
        # Pre-cast once: halves weight DMA bytes and VMEM footprint in the
        # projection kernels.
        self.qkv_w_bf16 = self.qkv_w.astype(jnp.bfloat16)
        self.proj_w_bf16 = self.proj_w.astype(jnp.bfloat16)

    def __call__(self, hidden_states, cu_seqlens, rotary_pos_emb):
        S, dim = hidden_states.shape
        nh, hd = self.num_heads, self.head_dim
        scale = 1.0 / math.sqrt(hd)

        # Pad the sequence to a tile multiple (fixes the old full-array tile
        # fallback); padded rows get a sentinel segment id and are masked.
        S_pad = ((S + ATTN_TILE - 1) // ATTN_TILE) * ATTN_TILE
        pad = S_pad - S
        x = jnp.pad(hidden_states, ((0, pad), (0, 0)))

        # QKV projection -> bf16 (tiled Pallas matmul, bf16 MXU / f32 accumulate)
        qkv = pallas_linear(x, self.qkv_w_bf16, self.qkv_b, jnp.bfloat16)
        qkv = qkv.reshape(S_pad, 3, nh, hd)
        # TODO(synk): consume the (S_pad, 3*dim) slab directly in the attention
        # kernel to remove these bf16 HBM transposes (see header TODO).
        q = jnp.transpose(qkv[:, 0], (1, 0, 2)).astype(jnp.float32)  # (nh,S,hd)
        k = jnp.transpose(qkv[:, 1], (1, 0, 2)).astype(jnp.float32)
        v = jnp.transpose(qkv[:, 2], (1, 0, 2))                      # bf16

        # RoPE hoisted out of the attention hot loop.  rotate_half sign and the
        # softmax scale are folded here; XLA fuses this elementwise work into
        # the transpose copies above.
        emb = jnp.concatenate([rotary_pos_emb, rotary_pos_emb], axis=-1)
        emb = jnp.pad(emb, ((0, pad), (0, 0)))
        cos = jnp.cos(emb)[None].astype(jnp.float32)   # (1, S_pad, hd)
        sin = jnp.sin(emb)[None].astype(jnp.float32)
        half = hd // 2

        def rot_half(t):
            return jnp.concatenate([-t[..., half:], t[..., :half]], axis=-1)

        q = ((q * cos + rot_half(q) * sin) * scale).astype(jnp.bfloat16)
        k = (k * cos + rot_half(k) * sin).astype(jnp.bfloat16)

        # Segment ids from cu_seqlens; padded rows/cols get sentinel id nseg.
        nseg = int(cu_seqlens.shape[0]) - 1
        pos = jnp.arange(S_pad)
        seg = jnp.where(
            pos < S,
            jnp.searchsorted(cu_seqlens, pos, side="right").astype(jnp.int32) - 1,
            jnp.int32(nseg))
        seg_row = seg.reshape(S_pad, 1)
        seg_col = seg.reshape(1, S_pad)

        # Per-q-tile range of k-blocks intersecting its segments (block-diagonal
        # mask) -> scalar-prefetched tile-skip schedule.
        cu_ext = jnp.concatenate(
            [cu_seqlens.astype(jnp.int32), jnp.array([S_pad], jnp.int32)])
        q_first = seg[0::ATTN_TILE]                 # seg id of each tile's first row
        q_last = seg[ATTN_TILE - 1::ATTN_TILE]      # seg id of each tile's last row
        kstart = (cu_ext[q_first] // ATTN_TILE).astype(jnp.int32)
        kend = ((cu_ext[q_last + 1] - 1) // ATTN_TILE).astype(jnp.int32)

        attn = pallas_varlen_attention(kstart, kend, q, k, v, seg_row, seg_col)
        attn = jnp.transpose(attn, (1, 0, 2)).reshape(S_pad, dim)   # bf16

        # Output projection (tiled Pallas matmul, f32 out); drop padded rows.
        out = pallas_linear(attn, self.proj_w_bf16, self.proj_b, jnp.float32)
        return out[:S]


# ----------------------------------------------------------------------------
# Pure-JAX f32 reference (mirrors the PyTorch forward) for correctness check
# ----------------------------------------------------------------------------
def reference_forward(mod, hidden_states, cu_seqlens, rotary_pos_emb):
    seq, dim = hidden_states.shape
    nh, hd = mod.num_heads, mod.head_dim
    qkv = hidden_states @ mod.qkv_w + mod.qkv_b
    qkv = qkv.reshape(seq, 3, nh, hd)
    q, k, v = qkv[:, 0], qkv[:, 1], qkv[:, 2]            # (seq, nh, hd)

    emb = jnp.concatenate([rotary_pos_emb, rotary_pos_emb], axis=-1)
    cos = jnp.cos(emb)[:, None, :]
    sin = jnp.sin(emb)[:, None, :]

    def rot_half(x):
        h = x.shape[-1] // 2
        return jnp.concatenate([-x[..., h:], x[..., :h]], axis=-1)

    q = q * cos + rot_half(q) * sin
    k = k * cos + rot_half(k) * sin

    seg_ids = jnp.searchsorted(cu_seqlens, jnp.arange(seq), side="right") - 1
    mask = jnp.where(seg_ids[:, None] == seg_ids[None, :], 0.0, -1e30)

    scale = 1.0 / math.sqrt(hd)
    s = jnp.einsum("qhd,khd->hqk", q, k) * scale + mask[None]
    p = jax.nn.softmax(s, axis=-1)
    o = jnp.einsum("hqk,khd->qhd", p, v).reshape(seq, dim)
    return o @ mod.proj_w + mod.proj_b


if __name__ == "__main__":
    key = jax.random.PRNGKey(0)
    k_param, k_hid, k_rope = jax.random.split(key, 3)

    dim = 128
    num_heads = 4          # head_dim = 32
    seq = 520              # not a tile multiple -> exercises the padding path
    head_dim = dim // num_heads

    mod = Qwen25VLVisionSdpaAttentionPallas(dim, num_heads, k_param)

    hidden_states = jax.random.normal(k_hid, (seq, dim), jnp.float32)
    rotary_pos_emb = jax.random.normal(k_rope, (seq, head_dim // 2), jnp.float32)
    # Four packed images -> block-diagonal mask exercises tile skipping.
    cu_seqlens = jnp.array([0, 128, 256, 384, 520], dtype=jnp.int32)

    out = mod(hidden_states, cu_seqlens, rotary_pos_emb)
    out = jax.block_until_ready(out)

    ref = reference_forward(mod, hidden_states, cu_seqlens, rotary_pos_emb)
    # Kernel runs MXU matmuls with bf16 weights/activations (softmax stats in
    # f32) and uses an approx reciprocal; compare with bf16-appropriate tolerance.
    np.testing.assert_allclose(np.asarray(out), np.asarray(ref),
                               rtol=5e-2, atol=1e-2)

    print("KERNEL_OK")
</pallas_src>

<mosaic_0001>
module attributes {stable_mosaic.version = 11 : i64} {
  func.func @_linear_kernel(%arg0: i32, %arg1: i32, %arg2: memref<160x128xf32, #tpu.memory_space<vmem>>, %arg3: memref<128x384xbf16, #tpu.memory_space<vmem>>, %arg4: memref<1x384xf32, #tpu.memory_space<vmem>>, %arg5: memref<160x384xbf16, #tpu.memory_space<vmem>>) attributes {dimension_semantics = [#tpu.dimension_semantics<parallel>, #tpu.dimension_semantics<parallel>], iteration_bounds = array<i64: 1, 4>, scalar_prefetch = 0 : i64, scratch_operands = 0 : i64, tpu.core_type = #tpu.core_type<tc>, window_params = [{transform_indices = @transform_0, window_bounds = array<i64: 160, 128>}, {transform_indices = @transform_1, window_bounds = array<i64: 128, 384>}, {transform_indices = @transform_2, window_bounds = array<i64: 1, 384>}, {transform_indices = @transform_3, window_bounds = array<i64: 160, 384>}]} {
    %c0 = arith.constant 0 : index
    %c0_0 = arith.constant 0 : index
    %0 = vector.load %arg2[%c0, %c0_0] : memref<160x128xf32, #tpu.memory_space<vmem>>, vector<160x128xf32>
    %1 = arith.truncf %0 : vector<160x128xf32> to vector<160x128xbf16>
    %c0_1 = arith.constant 0 : index
    %c0_2 = arith.constant 0 : index
    %2 = vector.load %arg3[%c0_1, %c0_2] : memref<128x384xbf16, #tpu.memory_space<vmem>>, vector<128x384xbf16>
    %cst = arith.constant dense<0.000000e+00> : vector<160x384xf32>
    %3 = tpu.matmul %1, %2, %cst {dimension_numbers = #tpu.dot_dimension_numbers<[1], [0], [0], [1], [0, 0, 1, 1], [], []>} : vector<160x128xbf16>, vector<128x384xbf16>, vector<160x384xf32> -> vector<160x384xf32>
    %c0_3 = arith.constant 0 : index
    %c0_4 = arith.constant 0 : index
    %4 = vector.load %arg4[%c0_3, %c0_4] : memref<1x384xf32, #tpu.memory_space<vmem>>, vector<1x384xf32>
    %5 = vector.broadcast %4 : vector<1x384xf32> to vector<160x384xf32>
    %6 = arith.addf %3, %5 : vector<160x384xf32>
    %7 = arith.truncf %6 : vector<160x384xf32> to vector<160x384xbf16>
    %c0_5 = arith.constant 0 : index
    %c0_6 = arith.constant 0 : index
    %8 = vector.load %arg5[%c0_5, %c0_6] : memref<160x384xbf16, #tpu.memory_space<vmem>>, vector<160x384xbf16>
    tpu.vector_store %arg5[%c0_5, %c0_6], %7 {strides = array<i32>} : memref<160x384xbf16, #tpu.memory_space<vmem>>, vector<160x384xbf16>,
    return
  }
  func.func @transform_0(%arg0: i32, %arg1: i32) -> (i32, i32) {
    %c0_i32 = arith.constant 0 : i32
    %c0_i32_0 = arith.constant 0 : i32
    return %arg1, %c0_i32 : i32, i32
  }
  func.func @transform_1(%arg0: i32, %arg1: i32) -> (i32, i32) {
    %c0_i32 = arith.constant 0 : i32
    %c0_i32_0 = arith.constant 0 : i32
    return %c0_i32, %arg0 : i32, i32
  }
  func.func @transform_2(%arg0: i32, %arg1: i32) -> (i32, i32) {
    %c0_i32 = arith.constant 0 : i32
    %c0_i32_0 = arith.constant 0 : i32
    return %c0_i32, %arg0 : i32, i32
  }
  func.func @transform_3(%arg0: i32, %arg1: i32) -> (i32, i32) {
    %c0_i32 = arith.constant 0 : i32
    return %arg1, %arg0 : i32, i32
  }
}

</mosaic_0001>

<bundles_post_ra>
// kernel: tpu_custom_call.1
= control target key start
LH: loop header
LB: loop body
LE: loop exit
PB: predicated region body
PF: predicated region fallthrough
CT: control target
= control target key end

     0   :  { %8 = vsyncpa [#allocation3], 0  ;;  %s1844_s0 = inlined_call_operand.hbm [shape: f32[640,128], index: 0, kind: input, shape index: {}]   ;;  %s1845_s1 = inlined_call_operand.hbm [shape: bf16[128,384], index: 1, kind: input, shape index: {}]   ;;  %s1846_s2 = inlined_call_operand.vmem [shape: f32[1,384], index: 2, kind: input, shape index: {}]   ;;  %s1847_s3 = inlined_call_operand.hbm [shape: bf16[640,384], index: 3, kind: output, shape index: {}]  }
   0x1   :  { %10 = vsyncpa [#allocation3 + $0x1], 0 }
   0x2   :  { %11 = vsyncpa [#allocation6], 0 }
   0x3   :  { %12 = vsyncpa [#allocation4], 0 }
   0x4   :  { %14 = vsyncpa [#allocation4 + $0x1], 0  ;;  %s1526_s12 = smov 0   ;;  %s1528_s13 = smov 0  }
   0x5   :  { %s1530_s14 = smov 0   ;;  %s1532_s15 = smov 0  }
   0x6   :  { %s1534_s16 = smov 0   ;;  %s1536_s17 = smov 0  }
   0x7 LB: > { %s1068_s18 = sadd.s32 4294967295, %s1494_s17   ;;  %s1069_s19 = sadd.s32 4294967294, %s1494_s17   ;;  %s1494_s17 = sphi %s1536_s17, %s20_s17   ;;  %s1490_s16 = sphi %s1534_s16, %s1861_s16   ;;  %s1486_s15 = sphi %s1532_s15, %s1860_s15   ;;  %s1482_s14 = sphi %s1530_s14, %s1859_s14   ;;  %s1478_s13 = sphi %s1528_s13, %s1858_s13   ;;  %s1474_s12 = sphi %s1526_s12, %s1857_s12  }
   0x8   : > { %p52_p0 = scmp.ne.s32.totalorder %s1478_s13, %s1474_s12  ;;  %p1560_p1 = scmp.eq.s32.totalorder %s1068_s18, 0 }
   0x9   : > { %p1564_p2 = scmp.eq.s32.totalorder %s1068_s18, 3  ;;  %p136_p3 = scmp.eq.s32.totalorder %s1069_s19, 3 }
   0xa   : > { %p1570_p4 = por %p1560_p1, %p52_p0  ;;  %p1070_p5 = scmp.ge.s32.totalorder %s1494_s17, 1 }
   0xb   : > { %p1575_p6 = por %p136_p3, %p52_p0  ;;  %p143_p7 = scmp.lt.s32.totalorder %s1494_s17, 5 }
   0xc   : > { %s1496_s25 = smov [#allocation5]   ;;  %s29_s28 = sadd.s32 1, %s1490_s16 }
   0xd   : > { %s1851_s23 = scalar_select %p1575_p6, 1, 0 }
   0xe   : > { %p1580_p8 = pnand %p1070_p5, %p143_p7  ;;  %s158_s26 = sshll.u32 %s1496_s25, 4  ;;  %s159_s26 = int_to_ptr.vmem [resolvable:$true] %s158_s26 }
   0xf   : > { %s1367_s29 = scalar_lea.vmem %s159_s26, 3072  ;;  %p1375_p3 = scmp.lt.s32.totalorder %s159_s26, %s159_s26 }
  0x10   : > { %p1251_p9 = pneg %p1580_p8  ;;  %p1368_p12 = scmp.ne.s32.totalorder %s159_s26, %s1367_s29 }
  0x11   : > { %p1376_p5 = scmp.lt.s32.totalorder %s1367_s29, %s1367_s29 }
  0x12   : > { %p1588_p10 = pnand %p1251_p9, %p1560_p1 }
  0x13   : > { %p1377_p7 = por %p1376_p5, %p1375_p3 }
  0x14   : > { %p1358_p11 = pneg %p1588_p10 }
  0x16   : > { %p1370_p13 = pnand %p1368_p12, %p1358_p11 }
  0x18   : > { %p1371_p0 = pneg %p1370_p13 }
  0x1a   : > { %p1378_p6 = pnand %p1377_p7, %p1371_p0 }
  0x1c   : > { %1381 = shalt.err (!%p1378_p6)
}
  0x1d   : > { %s1497_s30 = smov 192   ;;  %s1498_s4 = smov 12  }
  0x1e   : > { %1254 = dma.hbm_to_vmem [thread:$0]  (!%p1588_p10), %s1845_s1, 3072, %s159_s26, [#allocation6], %s1497_s30, %s1497_s30, %s1498_s4  }
  0x1f   : > { %p30_p9 = scmp.ge.s32.totalorder %s29_s28, 4  ;;  %s39_s7 = sadd.s32 1, %s1482_s14 }
  0x20   : > { %p46_p6 = scmp.ne.s32.totalorder %s1482_s14, %s1478_s13  ;;  %p47_p11 = scmp.eq.s32.totalorder %s1494_s17, 0 }
  0x21   : > { %s1863_s28 = smov (%p30_p9, %s29_s28), 0  ;;  %p1264_p0 = scmp.lt.s32.totalorder %s1494_s17, 4 }
  0x22   : > { %p48_p12 = por %p47_p11, %p46_p6  ;;  %p1608_p13 = por %p1564_p2, %p46_p6 }
  0x23   : > { %s36_s9 = ssub.s32 %s1490_s16, %s1863_s28  ;;  %s180_s10 = sand.u32 1, %s1482_s14  }
  0x24   : > { %p37_p3 = scmp.eq.s32.totalorder %s36_s9, 0  ;;  %s1239_s11 = smul.u32 160, %s180_s10 }
  0x25   : > { %s1144_s19 = smul.u32 2560, %s1490_s16  ;;  %p1620_p10 = pnand %p1264_p0, %p48_p12 }
  0x26   : > { %s1617_s18 = scalar_select %p37_p3, %s1482_s14, %s39_s7  }
  0x27   : > { %s184_s25 = scalar_lea.vmem [#allocation2], %s1239_s11  ;;  %s190_s30 = scalar_lea.hbm %s1844_s0, %s1144_s19 }
  0x28   : > { %s191_s26 = sshll.u32 %s184_s25, 4  ;;  %s181_s4 = scalar_lea.sflag [#allocation3], %s180_s10  ;;  %s192_s26 = int_to_ptr.vmem [resolvable:$true] %s191_s26 }
  0x29   : > { %p1384_p2 = pneg %p1620_p10  ;;  %s1395_s5 = scalar_lea.vmem %s192_s26, 2560 }
  0x2a   : > { %p1396_p5 = scmp.ne.s32.totalorder %s192_s26, %s1395_s5  ;;  %s1499_s6 = smov [#allocation2]  }
  0x2b   : > { %s1400_s7 = sshll.u32 %s1499_s6, 4  ;;  %s1401_s7 = int_to_ptr.vmem [resolvable:$false] %s1400_s7 }
  0x2c   : > { %p1398_p7 = pnand %p1396_p5, %p1384_p2  ;;  %s1402_s9 = scalar_lea.vmem %s1401_s7, 5120 }
  0x2d   : > { %p1403_p6 = scmp.lt.s32.totalorder %s192_s26, %s1401_s7  ;;  %p1404_p11 = scmp.lt.s32.totalorder %s1402_s9, %s1395_s5 }
  0x2e   : > { %p1399_p9 = pneg %p1398_p7 }
  0x2f   : > { %p1405_p12 = por %p1404_p11, %p1403_p6 }
  0x31   : > { %p1406_p0 = pnand %p1405_p12, %p1399_p9 }
  0x33   : > { %1409 = shalt.err (!%p1406_p0)
}
  0x34   : > { %s1500_s11 = smov 128   ;;  %s1501_s19 = smov 8  }
  0x35   : > { %1258 = dma.hbm_to_vmem [thread:$0]  (!%p1620_p10), %s190_s30, 2560, %s192_s26, %s181_s4, %s1500_s11, %s1500_s11, %s1501_s19  }
  0x36   : > { %203 = sbr.rel (%p1580_p8) target bundleno = 384 (0x180), region = 32  ;;  %s1634_s10 = sand.u32 (!%p1580_p8), 1, %s1478_s13  }
  0x37   : > { %s1240_s25 = smul.u32 (!%p1580_p8), 160, %s1634_s10  ;;  %s206_s29 = scalar_lea.sflag (!%p1580_p8), [#allocation3], %s1634_s10 }
  0x39   : > { %s1638_s21 = scalar_lea.vmem (!%p1580_p8), [#allocation2], %s1240_s25 }
  0x3b   : > { %1461 = dma.done.wait (%p1570_p4), %s206_s29, 2560  }
  0x3c   : > { %1463 = vsyncadd (%p1570_p4), %s206_s29, 4294964736 }
  0x3d   : > { %1465 = dma.done.wait (%p1560_p1), [#allocation6], 3072  }
  0x3e   : > { %1467 = vsyncadd (%p1560_p1), [#allocation6], 4294964224  ;;  %v1502_v0 = vmov 0   ;;  %v1324_v1 = vld [vmem:[#allocation5 + $0xac] ss:$12 sps:$4 sm:$0xff]   ;;  %v250_v10 = vld [vmem:[%s1638_s21] sm:$0xff]  ;;  %v314_v55 = vlaneseq }
  0x3f   : > { %489 = vmatprep.mubr.bf16.mxu0 %v1502_v0  ;;  %v1326_v2 = vld [vmem:[#allocation5 + $0xa8] ss:$12 sps:$4 sm:$0xff]   ;;  %457 = vmatprep.subr.bf16.mxu0 %v1324_v1  ;;  %v1329_v4 = vld [vmem:[#allocation5 + $0x90] ss:$12 sps:$4 sm:$0xff]   ;;  %v1332_v6 = vld [vmem:[#allocation5 + $0x78] ss:$12 sps:$4 sm:$0xff]  }
  0x40   : > { %v1327_v3 = vld [vmem:[#allocation5 + $0x94] ss:$12 sps:$4 sm:$0xff]   ;;  %458 = vmatpush1.bf16.msra.mxu0 %v1326_v2  ;;  %v1330_v5 = vld [vmem:[#allocation5 + $0x7c] ss:$12 sps:$4 sm:$0xff]   ;;  %v1333_v7 = vld [vmem:[#allocation5 + $0x64] ss:$12 sps:$4 sm:$0xff]  }
  0x41   : > { %459 = vmatprep.subr.bf16.mxu0 %v1327_v3  ;;  %v1335_v8 = vld [vmem:[#allocation5 + $0x60] ss:$12 sps:$4 sm:$0xff]   ;;  %v1348_v13 = vld [vmem:[#allocation5 + $0xb0] ss:$12 sps:$4 sm:$0xff]   ;;  %v1349_v14 = vld [vmem:[#allocation5 + $0x98] ss:$12 sps:$4 sm:$0xff]  }
  0x42   : > { %v1336_v9 = vld [vmem:[#allocation5 + $0x4c] ss:$12 sps:$4 sm:$0xff]   ;;  %1203 = vmatprep.subr.bf16.mxu1 %v1348_v13  ;;  %v1338_v15 = vld [vmem:[#allocation5 + $0x48] ss:$12 sps:$4 sm:$0xff]   ;;  %v1341_v18 = vld [vmem:[#allocation5 + $0x30] ss:$12 sps:$4 sm:$0xff]  }
  0x43   : > { %v251_v11 = vld [vmem:[%s1638_s21 + $0x8] sm:$0xff]  ;;  %1204 = vmatpush3.bf16.msra.mxu1 %v1348_v13  ;;  %v1339_v16 = vld [vmem:[#allocation5 + $0x34] ss:$12 sps:$4 sm:$0xff]   ;;  %v1344_v21 = vld [vmem:[#allocation5 + $0x18] ss:$12 sps:$4 sm:$0xff]   ;;  %v315_v56 = vshrl.u32 %v314_v55, 7 }
  0x44   : > { %460 = vmatpush1.bf16.msra.mxu0 %v1329_v4  ;;  %v270_v12 = vpack.c.bf16 %v251_v11, %v250_v10  ;;  %1205 = vmatprep.subr.bf16.mxu1 %v1349_v14  ;;  %v1350_v17 = vld [vmem:[#allocation5 + $0x80] ss:$12 sps:$4 sm:$0xff]   ;;  %v1342_v19 = vld [vmem:[#allocation5 + $0x1c] ss:$12 sps:$4 sm:$0xff]   ;;  %v1345_v22 = vld [vmem:[#allocation5 + $0x4] ss:$12 sps:$4 sm:$0xff]  }
  0x45   : > { %461 = vmatprep.subr.bf16.mxu0 %v1330_v5  ;;  %v1351_v20 = vld [vmem:[#allocation5 + $0x68] ss:$12 sps:$4 sm:$0xff]   ;;  %v1352_v23 = vld [vmem:[#allocation5 + $0x50] ss:$12 sps:$4 sm:$0xff]   ;;  %v1347_v24 = vld [vmem:[#allocation5] ss:$12 sps:$4 sm:$0xff]  }
  0x46   : > { %1219 = vmatprep.mubr.bf16.mxu1 %v270_v12  ;;  %v1353_v25 = vld [vmem:[#allocation5 + $0x38] ss:$12 sps:$4 sm:$0xff]   ;;  %v1354_v26 = vld [vmem:[#allocation5 + $0x20] ss:$12 sps:$4 sm:$0xff]   ;;  %v252_v27 = vld [vmem:[%s1638_s21 + $0x10] sm:$0xff]  ;;  %v316_v57 = vsub.s32 0, %v315_v56 }
  0x47   : > { %1206 = vmatpush3.bf16.msra.mxu1 %v1349_v14  ;;  %v253_v28 = vld [vmem:[%s1638_s21 + $0x18] sm:$0xff]  ;;  %v1355_v29 = vld [vmem:[#allocation5 + $0x8] ss:$12 sps:$4 sm:$0xff]   ;;  %v254_v31 = vld [vmem:[%s1638_s21 + $0x20] sm:$0xff]  ;;  %v320_v58 = vsub.s32 1, %v315_v56  ;;  %s1241_s24 = smul.u32 240, %s1634_s10 }
  0x48   : > { %462 = vmatpush1.bf16.msra.mxu0 %v1332_v6  ;;  %1207 = vmatprep.subr.bf16.mxu1 %v1350_v17  ;;  %v271_v30 = vpack.c.bf16 %v253_v28, %v252_v27  ;;  %v255_v32 = vld [vmem:[%s1638_s21 + $0x28] sm:$0xff]  ;;  %v256_v34 = vld [vmem:[%s1638_s21 + $0x30] sm:$0xff]  ;;  %v257_v35 = vld [vmem:[%s1638_s21 + $0x38] sm:$0xff]  ;;  %v324_v4 = vsub.s32 2, %v315_v56  ;;  %s1266_s27 = smul.u32 3840, %s1486_s15  ;;  %s944_s15 = scalar_lea.sflag [#allocation4], %s1634_s10 }
  0x49   : > { %463 = vmatprep.subr.bf16.mxu0 %v1333_v7  ;;  %v272_v33 = vpack.c.bf16 %v255_v32, %v254_v31  ;;  %v258_v36 = vld [vmem:[%s1638_s21 + $0x40] sm:$0xff]  ;;  %v259_v37 = vld [vmem:[%s1638_s21 + $0x48] sm:$0xff]  ;;  %v273_v38 = vpack.c.bf16 %v257_v35, %v256_v34  ;;  %v260_v40 = vld [vmem:[%s1638_s21 + $0x50] sm:$0xff]  ;;  %s1688_s26 = scalar_lea.vmem [#allocation7], %s1241_s24  ;;  %s1503_s9 = smov [#allocation7]  }
  0x4a   : > { %v274_v39 = vpack.c.bf16 %v259_v37, %v258_v36  ;;  %v261_v41 = vld [vmem:[%s1638_s21 + $0x58] sm:$0xff]  ;;  %v262_v42 = vld [vmem:[%s1638_s21 + $0x60] sm:$0xff]  ;;  %v263_v43 = vld [vmem:[%s1638_s21 + $0x68] sm:$0xff]  ;;  %s960_s30 = sshll.u32 %s1688_s26, 4  ;;  %s1794_s6 = scalar_lea.hbm %s1847_s3, %s1266_s27  ;;  %s1796_s30 = int_to_ptr.vmem [resolvable:$true] %s960_s30 }
  0x4b   : > { %1208 = vmatpush3.bf16.msra.mxu1 %v1350_v17  ;;  %v275_v44 = vpack.c.bf16 %v261_v41, %v260_v40  ;;  %v276_v45 = vpack.c.bf16 %v263_v43, %v262_v42  ;;  %v266_v46 = vld [vmem:[%s1638_s21 + $0x80] sm:$0xff]  ;;  %v267_v47 = vld [vmem:[%s1638_s21 + $0x88] sm:$0xff]  ;;  %v264_v48 = vld [vmem:[%s1638_s21 + $0x70] sm:$0xff]  ;;  %s1410_s7 = scalar_lea.vmem %s1796_s30, 3840  ;;  %s1414_s11 = sshll.u32 %s1503_s9, 4  ;;  %s1415_s11 = int_to_ptr.vmem [resolvable:$false] %s1414_s11 }
  0x4c   : > { %464 = vmatpush1.bf16.msra.mxu0 %v1335_v8  ;;  %1209 = vmatprep.subr.bf16.mxu1 %v1351_v20  ;;  %v265_v49 = vld [vmem:[%s1638_s21 + $0x78] sm:$0xff]  ;;  %v278_v50 = vpack.c.bf16 %v267_v47, %v266_v46  ;;  %v268_v52 = vld [vmem:[%s1638_s21 + $0x90] sm:$0xff]  ;;  %v312_v59 = vld [vmem:[%s1846_s2] sm:$0x7]  ;;  %p1411_p1 = scmp.ne.s32.totalorder %s1796_s30, %s1410_s7  ;;  %s1416_s19 = scalar_lea.vmem %s1415_s11, 7680 }
  0x4d   : > { %465 = vmatprep.subr.bf16.mxu0 %v1336_v9  ;;  %v277_v51 = vpack.c.bf16 %v265_v49, %v264_v48  ;;  %v269_v53 = vld [vmem:[%s1638_s21 + $0x98] sm:$0xff]  ;;  %v1681_v60 = vrot.slane %v312_v59, %v316_v57  ;;  %v1683_v61 = vrot.slane %v312_v59, %v320_v58  ;;  %v1693_v10 = vrot.slane %v312_v59, %v324_v4  ;;  %p1417_p3 = scmp.lt.s32.totalorder %s1796_s30, %s1415_s11  ;;  %p1418_p10 = scmp.lt.s32.totalorder %s1416_s19, %s1410_s7 }
  0x4e   : > { %v279_v54 = vpack.c.bf16 %v269_v53, %v268_v52  ;;  %p1412_p4 = pnand %p1411_p1, %p1608_p13 }
  0x4f   : > { %1210 = vmatpush3.bf16.msra.mxu1 %v1351_v20  ;;  %p1419_p2 = por %p1418_p10, %p1417_p3 }
  0x50   : > { %466 = vmatpush1.bf16.msra.mxu0 %v1338_v15  ;;  %1211 = vmatprep.subr.bf16.mxu1 %v1352_v23  ;;  %p1413_p8 = pneg %p1412_p4 }
  0x51   : > { %467 = vmatprep.subr.bf16.mxu0 %v1339_v16 }
  0x52   : > { %p1420_p5 = pnand %p1419_p2, %p1413_p8 }
  0x53   : > { %1212 = vmatpush3.bf16.msra.mxu1 %v1352_v23 }
  0x54   : > { %468 = vmatpush1.bf16.msra.mxu0 %v1341_v18  ;;  %1213 = vmatprep.subr.bf16.mxu1 %v1353_v25 }
  0x55   : > { %469 = vmatprep.subr.bf16.mxu0 %v1342_v19 }
  0x57   : > { %1214 = vmatpush3.bf16.msra.mxu1 %v1353_v25 }
  0x58   : > { %470 = vmatpush1.bf16.msra.mxu0 %v1344_v21  ;;  %1215 = vmatprep.subr.bf16.mxu1 %v1354_v26 }
  0x59   : > { %471 = vmatprep.subr.bf16.mxu0 %v1345_v22 }
  0x5b   : > { %1216 = vmatpush3.bf16.msra.mxu1 %v1354_v26 }
  0x5c   : > { %472 = vmatpush1.bf16.msra.mxu0 %v1347_v24  ;;  %1217 = vmatprep.subr.bf16.mxu1 %v1355_v29 }
  0x5f   : > { %490 = vmatmul.mubr.bf16.vlgmr.msra.gmra.mxu0 %v270_v12  ;;  %1218 = vmatpush3.bf16.msra.mxu1 %v1355_v29 }
  0x60   : > { %499 = vmatprep.mubr.bf16.mxu0 %v1502_v0 }
  0x62   : > { %1220 = vmatmul.mubr.bf16.vlgmr.msra.gmra.mxu1 %v271_v30 }
  0x63   : > { %1223 = vmatprep.mubr.bf16.mxu1 %v272_v33 }
  0x67   : > { %500 = vmatmul.mubr.bf16.gmra.mxu0 %v271_v30 }
  0x68   : > { %509 = vmatprep.mubr.bf16.mxu0 %v1502_v0 }
  0x6a   : > { %1224 = vmatmul.mubr.bf16.gmra.mxu1 %v273_v38 }
  0x6b   : > { %1227 = vmatprep.mubr.bf16.mxu1 %v274_v39 }
  0x6f   : > { %510 = vmatmul.mubr.bf16.gmra.mxu0 %v272_v33 }
  0x70   : > { %519 = vmatprep.mubr.bf16.mxu0 %v1502_v0 }
  0x72   : > { %1228 = vmatmul.mubr.bf16.gmra.mxu1 %v275_v44 }
  0x73   : > { %1231 = vmatprep.mubr.bf16.mxu1 %v276_v45 }
  0x77   : > { %520 = vmatmul.mubr.bf16.gmra.mxu0 %v273_v38 }
  0x78   : > { %529 = vmatprep.mubr.bf16.mxu0 %v1502_v0 }
  0x7a   : > { %1232 = vmatmul.mubr.bf16.gmra.mxu1 %v277_v51 }
  0x7b   : > { %1235 = vmatprep.mubr.bf16.mxu1 %v278_v50 }
  0x7f   : > { %530 = vmatmul.mubr.bf16.gmra.mxu0 %v274_v39 }
  0x80   : > { %539 = vmatprep.mubr.bf16.mxu0 %v1502_v0 }
  0x82   : > { %1236 = vmatmul.mubr.bf16.gmra.mxu1 %v279_v54 }
  0x87   : > { %540 = vmatmul.mubr.bf16.gmra.mxu0 %v275_v44 }
  0x88   : > { %549 = vmatprep.mubr.bf16.mxu0 %v1502_v0 }
  0x8f   : > { %550 = vmatmul.mubr.bf16.gmra.mxu0 %v276_v45 }
  0x90   : > { %559 = vmatprep.mubr.bf16.mxu0 %v1502_v0 }
  0x97   : > { %560 = vmatmul.mubr.bf16.gmra.mxu0 %v277_v51 }
  0x98   : > { %569 = vmatprep.mubr.bf16.mxu0 %v1502_v0 }
  0x9f   : > { %570 = vmatmul.mubr.bf16.gmra.mxu0 %v278_v50 }
  0xa0   : > { %579 = vmatprep.mubr.bf16.mxu0 %v1502_v0 }
  0xa7   : > { %580 = vmatmul.mubr.bf16.gmra.mxu0 %v279_v54 }
 0x11f   : > { %v491_v62 = vpop.f32.mrf.mxu0 }
 0x120   : > { %v492_v1 = vadd.f32 %v491_v62, %v1681_v60 }
 0x121   : > { %v493_v63 = vpop.f32.mrf.mxu0 }
 0x122   : > { %v494_v0 = vadd.f32 %v493_v63, %v1683_v61  ;;  %v1221_v15 = vpop.f32.mrf.mxu1 }
 0x123   : > { %v495_v2 = vpop.f32.mrf.mxu0  ;;  %v633_v17 = vadd.f32 %v1221_v15, %v1693_v10 }
 0x124   : > { %v1145_v3 = vpack.c.bf16 %v494_v0, %v492_v1  ;;  %v496_v6 = vadd.f32 %v495_v2, %v1681_v60  ;;  %v624_v19 = vpop.f32.mrf.mxu1 }
 0x125   : > { %v497_v5 = vpop.f32.mrf.mxu0  ;;  %v1150_v22 = vpack.c.bf16 %v633_v17, %v633_v17  ;;  %v625_v23 = vadd.f32 %v624_v19, %v1693_v10 }
 0x126   : > { %903 = vst [vmem:[%s1688_s26] sm:$0xff] %v1145_v3  ;;  %v498_v7 = vadd.f32 %v497_v5, %v1683_v61  ;;  %v1222_v25 = vpop.f32.mrf.mxu1 }
 0x127   : > { %v501_v8 = vpop.f32.mrf.mxu0  ;;  %908 = vst [vmem:[%s1688_s26 + $0x20] sm:$0xf] %v1150_v22  ;;  %v1146_v27 = vpack.c.bf16 %v625_v23, %v625_v23  ;;  %v636_v28 = vadd.f32 %v1222_v25, %v1693_v10 }
 0x128   : > { %v1147_v9 = vpack.c.bf16 %v498_v7, %v496_v6  ;;  %v502_v12 = vadd.f32 %v501_v8, %v1681_v60  ;;  %v627_v30 = vpop.f32.mrf.mxu1 }
 0x129   : > { %v503_v11 = vpop.f32.mrf.mxu0  ;;  %904 = vst [vmem:[%s1688_s26 + $0x8] sm:$0xf] %v1146_v27  ;;  %v1152_v33 = vpack.c.bf16 %v636_v28, %v636_v28  ;;  %v628_v34 = vadd.f32 %v627_v30, %v1693_v10 }
 0x12a   : > { %905 = vst [vmem:[%s1688_s26 + $0xc] sm:$0xff] %v1147_v9  ;;  %v504_v13 = vadd.f32 %v503_v11, %v1683_v61  ;;  %v1225_v36 = vpop.f32.mrf.mxu1 }
 0x12b   : > { %v505_v14 = vpop.f32.mrf.mxu0  ;;  %910 = vst [vmem:[%s1688_s26 + $0x2c] sm:$0xf] %v1152_v33  ;;  %v1148_v38 = vpack.c.bf16 %v628_v34, %v628_v34  ;;  %v649_v39 = vadd.f32 %v1225_v36, %v1693_v10 }
 0x12c   : > { %v1149_v16 = vpack.c.bf16 %v504_v13, %v502_v12  ;;  %v506_v20 = vadd.f32 %v505_v14, %v1681_v60  ;;  %v640_v41 = vpop.f32.mrf.mxu1 }
 0x12d   : > { %v507_v18 = vpop.f32.mrf.mxu0  ;;  %906 = vst [vmem:[%s1688_s26 + $0x14] sm:$0xf] %v1148_v38  ;;  %v1158_v44 = vpack.c.bf16 %v649_v39, %v649_v39  ;;  %v641_v45 = vadd.f32 %v640_v41, %v1693_v10 }
 0x12e   : > { %907 = vst [vmem:[%s1688_s26 + $0x18] sm:$0xff] %v1149_v16  ;;  %v508_v21 = vadd.f32 %v507_v18, %v1683_v61  ;;  %v1226_v47 = vpop.f32.mrf.mxu1 }
 0x12f   : > { %v511_v24 = vpop.f32.mrf.mxu0  ;;  %916 = vst [vmem:[%s1688_s26 + $0x50] sm:$0xf] %v1158_v44  ;;  %v1154_v49 = vpack.c.bf16 %v641_v45, %v641_v45  ;;  %v652_v50 = vadd.f32 %v1226_v47, %v1693_v10 }
 0x130   : > { %v1151_v26 = vpack.c.bf16 %v508_v21, %v506_v20  ;;  %v512_v31 = vadd.f32 %v511_v24, %v1681_v60  ;;  %v643_v52 = vpop.f32.mrf.mxu1 }
 0x131   : > { %v513_v29 = vpop.f32.mrf.mxu0  ;;  %912 = vst [vmem:[%s1688_s26 + $0x38] sm:$0xf] %v1154_v49  ;;  %v1160_v55 = vpack.c.bf16 %v652_v50, %v652_v50  ;;  %v644_v56 = vadd.f32 %v643_v52, %v1693_v10 }
 0x132   : > { %909 = vst [vmem:[%s1688_s26 + $0x24] sm:$0xff] %v1151_v26  ;;  %v514_v32 = vadd.f32 %v513_v29, %v1683_v61  ;;  %v1229_v58 = vpop.f32.mrf.mxu1 }
 0x133   : > { %v515_v35 = vpop.f32.mrf.mxu0  ;;  %918 = vst [vmem:[%s1688_s26 + $0x5c] sm:$0xf] %v1160_v55  ;;  %v1156_v62 = vpack.c.bf16 %v644_v56, %v644_v56  ;;  %v665_v63 = vadd.f32 %v1229_v58, %v1693_v10 }
 0x134   : > { %v1153_v37 = vpack.c.bf16 %v514_v32, %v512_v31  ;;  %v516_v42 = vadd.f32 %v515_v35, %v1681_v60  ;;  %v656_v0 = vpop.f32.mrf.mxu1 }
 0x135   : > { %v517_v40 = vpop.f32.mrf.mxu0  ;;  %914 = vst [vmem:[%s1688_s26 + $0x44] sm:$0xf] %v1156_v62  ;;  %v1166_v4 = vpack.c.bf16 %v665_v63, %v665_v63  ;;  %v657_v5 = vadd.f32 %v656_v0, %v1693_v10 }
 0x136   : > { %911 = vst [vmem:[%s1688_s26 + $0x30] sm:$0xff] %v1153_v37  ;;  %v518_v43 = vadd.f32 %v517_v40, %v1683_v61  ;;  %v1230_v7 = vpop.f32.mrf.mxu1 }
 0x137   : > { %v521_v46 = vpop.f32.mrf.mxu0  ;;  %924 = vst [vmem:[%s1688_s26 + $0x80] sm:$0xf] %v1166_v4  ;;  %v1162_v9 = vpack.c.bf16 %v657_v5, %v657_v5  ;;  %v668_v11 = vadd.f32 %v1230_v7, %v1693_v10 }
 0x138   : > { %v1155_v48 = vpack.c.bf16 %v518_v43, %v516_v42  ;;  %v522_v53 = vadd.f32 %v521_v46, %v1681_v60  ;;  %v659_v13 = vpop.f32.mrf.mxu1 }
 0x139   : > { %v523_v51 = vpop.f32.mrf.mxu0  ;;  %920 = vst [vmem:[%s1688_s26 + $0x68] sm:$0xf] %v1162_v9  ;;  %v1168_v16 = vpack.c.bf16 %v668_v11, %v668_v11  ;;  %v660_v17 = vadd.f32 %v659_v13, %v1693_v10 }
 0x13a   : > { %913 = vst [vmem:[%s1688_s26 + $0x3c] sm:$0xff] %v1155_v48  ;;  %v524_v54 = vadd.f32 %v523_v51, %v1683_v61  ;;  %v1233_v19 = vpop.f32.mrf.mxu1 }
 0x13b   : > { %v525_v57 = vpop.f32.mrf.mxu0  ;;  %926 = vst [vmem:[%s1688_s26 + $0x8c] sm:$0xf] %v1168_v16  ;;  %v1164_v21 = vpack.c.bf16 %v660_v17, %v660_v17  ;;  %v681_v22 = vadd.f32 %v1233_v19, %v1693_v10 }
 0x13c   : > { %v1157_v59 = vpack.c.bf16 %v524_v54, %v522_v53  ;;  %v526_v2 = vadd.f32 %v525_v57, %v1681_v60  ;;  %v672_v24 = vpop.f32.mrf.mxu1 }
 0x13d   : > { %v527_v1 = vpop.f32.mrf.mxu0  ;;  %922 = vst [vmem:[%s1688_s26 + $0x74] sm:$0xf] %v1164_v21  ;;  %v1174_v27 = vpack.c.bf16 %v681_v22, %v681_v22  ;;  %v673_v28 = vadd.f32 %v672_v24, %v1693_v10 }
 0x13e   : > { %915 = vst [vmem:[%s1688_s26 + $0x48] sm:$0xff] %v1157_v59  ;;  %v528_v3 = vadd.f32 %v527_v1, %v1683_v61  ;;  %v1234_v30 = vpop.f32.mrf.mxu1 }
 0x13f   : > { %v531_v6 = vpop.f32.mrf.mxu0  ;;  %932 = vst [vmem:[%s1688_s26 + $0xb0] sm:$0xf] %v1174_v27  ;;  %v1170_v32 = vpack.c.bf16 %v673_v28, %v673_v28  ;;  %v684_v33 = vadd.f32 %v1234_v30, %v1693_v10 }
 0x140   : > { %v1159_v8 = vpack.c.bf16 %v528_v3, %v526_v2  ;;  %v532_v14 = vadd.f32 %v531_v6, %v1681_v60  ;;  %v675_v35 = vpop.f32.mrf.mxu1 }
 0x141   : > { %v533_v12 = vpop.f32.mrf.mxu0  ;;  %928 = vst [vmem:[%s1688_s26 + $0x98] sm:$0xf] %v1170_v32  ;;  %v1176_v38 = vpack.c.bf16 %v684_v33, %v684_v33  ;;  %v676_v39 = vadd.f32 %v675_v35, %v1693_v10 }
 0x142   : > { %917 = vst [vmem:[%s1688_s26 + $0x54] sm:$0xff] %v1159_v8  ;;  %v534_v15 = vadd.f32 %v533_v12, %v1683_v61  ;;  %v1237_v41 = vpop.f32.mrf.mxu1 }
 0x143   : > { %v535_v18 = vpop.f32.mrf.mxu0  ;;  %934 = vst [vmem:[%s1688_s26 + $0xbc] sm:$0xf] %v1176_v38  ;;  %v1172_v43 = vpack.c.bf16 %v676_v39, %v676_v39  ;;  %v697_v44 = vadd.f32 %v1237_v41, %v1693_v10 }
 0x144   : > { %v1161_v20 = vpack.c.bf16 %v534_v15, %v532_v14  ;;  %v536_v25 = vadd.f32 %v535_v18, %v1681_v60  ;;  %v688_v46 = vpop.f32.mrf.mxu1 }
 0x145   : > { %v537_v23 = vpop.f32.mrf.mxu0  ;;  %930 = vst [vmem:[%s1688_s26 + $0xa4] sm:$0xf] %v1172_v43  ;;  %v1182_v49 = vpack.c.bf16 %v697_v44, %v697_v44  ;;  %v689_v50 = vadd.f32 %v688_v46, %v1693_v10 }
 0x146   : > { %919 = vst [vmem:[%s1688_s26 + $0x60] sm:$0xff] %v1161_v20  ;;  %v538_v26 = vadd.f32 %v537_v23, %v1683_v61  ;;  %v1238_v52 = vpop.f32.mrf.mxu1 }
 0x147   : > { %v541_v29 = vpop.f32.mrf.mxu0  ;;  %940 = vst [vmem:[%s1688_s26 + $0xe0] sm:$0xf] %v1182_v49  ;;  %v1178_v54 = vpack.c.bf16 %v689_v50, %v689_v50  ;;  %v700_v55 = vadd.f32 %v1238_v52, %v1693_v10 }
 0x148   : > { %v1163_v31 = vpack.c.bf16 %v538_v26, %v536_v25  ;;  %v542_v36 = vadd.f32 %v541_v29, %v1681_v60  ;;  %v691_v57 = vpop.f32.mrf.mxu1 }
 0x149   : > { %v543_v34 = vpop.f32.mrf.mxu0  ;;  %936 = vst [vmem:[%s1688_s26 + $0xc8] sm:$0xf] %v1178_v54  ;;  %v1184_v62 = vpack.c.bf16 %v700_v55, %v700_v55  ;;  %v692_v63 = vadd.f32 %v691_v57, %v1693_v10 }
 0x14a   : > { %921 = vst [vmem:[%s1688_s26 + $0x6c] sm:$0xff] %v1163_v31  ;;  %v544_v37 = vadd.f32 %v543_v34, %v1683_v61 }
 0x14b   : > { %v545_v40 = vpop.f32.mrf.mxu0  ;;  %942 = vst [vmem:[%s1688_s26 + $0xec] sm:$0xf] %v1184_v62  ;;  %v1180_v2 = vpack.c.bf16 %v692_v63, %v692_v63 }
 0x14c   : > { %v1165_v42 = vpack.c.bf16 %v544_v37, %v542_v36  ;;  %v546_v47 = vadd.f32 %v545_v40, %v1681_v60 }
 0x14d   : > { %v547_v45 = vpop.f32.mrf.mxu0  ;;  %938 = vst [vmem:[%s1688_s26 + $0xd4] sm:$0xf] %v1180_v2 }
 0x14e   : > { %923 = vst [vmem:[%s1688_s26 + $0x78] sm:$0xff] %v1165_v42  ;;  %v548_v48 = vadd.f32 %v547_v45, %v1683_v61 }
 0x14f   : > { %v551_v51 = vpop.f32.mrf.mxu0 }
 0x150   : > { %v1167_v53 = vpack.c.bf16 %v548_v48, %v546_v47  ;;  %v552_v58 = vadd.f32 %v551_v51, %v1681_v60 }
 0x151   : > { %v553_v56 = vpop.f32.mrf.mxu0 }
 0x152   : > { %925 = vst [vmem:[%s1688_s26 + $0x84] sm:$0xff] %v1167_v53  ;;  %v554_v59 = vadd.f32 %v553_v56, %v1683_v61 }
 0x153   : > { %v555_v1 = vpop.f32.mrf.mxu0 }
 0x154   : > { %v1169_v0 = vpack.c.bf16 %v554_v59, %v552_v58  ;;  %v556_v4 = vadd.f32 %v555_v1, %v1681_v60 }
 0x155   : > { %v557_v3 = vpop.f32.mrf.mxu0 }
 0x156   : > { %927 = vst [vmem:[%s1688_s26 + $0x90] sm:$0xff] %v1169_v0  ;;  %v558_v5 = vadd.f32 %v557_v3, %v1683_v61 }
 0x157   : > { %v561_v6 = vpop.f32.mrf.mxu0 }
 0x158   : > { %v1171_v7 = vpack.c.bf16 %v558_v5, %v556_v4  ;;  %v562_v9 = vadd.f32 %v561_v6, %v1681_v60 }
 0x159   : > { %v563_v8 = vpop.f32.mrf.mxu0 }
 0x15a   : > { %929 = vst [vmem:[%s1688_s26 + $0x9c] sm:$0xff] %v1171_v7  ;;  %v564_v10 = vadd.f32 %v563_v8, %v1683_v61 }
 0x15b   : > { %v565_v11 = vpop.f32.mrf.mxu0 }
 0x15c   : > { %v1173_v12 = vpack.c.bf16 %v564_v10, %v562_v9  ;;  %v566_v14 = vadd.f32 %v565_v11, %v1681_v60 }
 0x15d   : > { %v567_v13 = vpop.f32.mrf.mxu0 }
 0x15e   : > { %931 = vst [vmem:[%s1688_s26 + $0xa8] sm:$0xff] %v1173_v12  ;;  %v568_v15 = vadd.f32 %v567_v13, %v1683_v61 }
 0x15f   : > { %v571_v16 = vpop.f32.mrf.mxu0 }
 0x160   : > { %v1175_v17 = vpack.c.bf16 %v568_v15, %v566_v14  ;;  %v572_v19 = vadd.f32 %v571_v16, %v1681_v60 }
 0x161   : > { %v573_v18 = vpop.f32.mrf.mxu0 }
 0x162   : > { %933 = vst [vmem:[%s1688_s26 + $0xb4] sm:$0xff] %v1175_v17  ;;  %v574_v20 = vadd.f32 %v573_v18, %v1683_v61 }
 0x163   : > { %v575_v21 = vpop.f32.mrf.mxu0 }
 0x164   : > { %v1177_v22 = vpack.c.bf16 %v574_v20, %v572_v19  ;;  %v576_v24 = vadd.f32 %v575_v21, %v1681_v60 }
 0x165   : > { %v577_v23 = vpop.f32.mrf.mxu0 }
 0x166   : > { %935 = vst [vmem:[%s1688_s26 + $0xc0] sm:$0xff] %v1177_v22  ;;  %v578_v25 = vadd.f32 %v577_v23, %v1683_v61 }
 0x167   : > { %v581_v26 = vpop.f32.mrf.mxu0 }
 0x168   : > { %v1179_v27 = vpack.c.bf16 %v578_v25, %v576_v24  ;;  %v582_v29 = vadd.f32 %v581_v26, %v1681_v60 }
 0x169   : > { %v583_v28 = vpop.f32.mrf.mxu0 }
 0x16a   : > { %937 = vst [vmem:[%s1688_s26 + $0xcc] sm:$0xff] %v1179_v27  ;;  %v584_v30 = vadd.f32 %v583_v28, %v1683_v61 }
 0x16b   : > { %v585_v31 = vpop.f32.mrf.mxu0 }
 0x16c   : > { %v1181_v32 = vpack.c.bf16 %v584_v30, %v582_v29  ;;  %v586_v34 = vadd.f32 %v585_v31, %v1681_v60 }
 0x16d   : > { %v587_v33 = vpop.f32.mrf.mxu0 }
 0x16e   : > { %939 = vst [vmem:[%s1688_s26 + $0xd8] sm:$0xff] %v1181_v32  ;;  %v588_v35 = vadd.f32 %v587_v33, %v1683_v61 }
 0x170   : > { %v1183_v36 = vpack.c.bf16 %v588_v35, %v586_v34 }
 0x172   : > { %941 = vst [vmem:[%s1688_s26 + $0xe4] sm:$0xff] %v1183_v36 }
 0x173   : > { %1423 = shalt.err (!%p1420_p5)
}
 0x174   : > { %s1424_s25 = scalar_lea.hbm %s1794_s6, 3840  ;;  %s1428_s20 = scalar_lea.hbm %s1847_s3, 15360 }
 0x175   : > { %p1425_p7 = scmp.ne.s32.totalorder %s1794_s6, %s1424_s25  ;;  %p1429_p11 = scmp.lt.s32.totalorder %s1794_s6, %s1847_s3 }
 0x176   : > { %p1430_p12 = scmp.lt.s32.totalorder %s1428_s20, %s1424_s25 }
 0x177   : > { %p1426_p9 = pnand %p1425_p7, %p1608_p13 }
 0x178   : > { %p1431_p0 = por %p1430_p12, %p1429_p11 }
 0x179   : > { %p1427_p6 = pneg %p1426_p9 }
 0x17b   : > { %p1432_p1 = pnand %p1431_p0, %p1427_p6 }
 0x17d   : > { %1435 = shalt.err (!%p1432_p1)
}
 0x17e   : > { %s1504_s26 = smov 192   ;;  %s1505_s27 = smov 12  }
 0x17f   : > { %1249 = dma.vmem_to_hbm [thread:$0]  (%p1608_p13), %s1796_s30, 3840, %s1794_s6, %s944_s15, %s1504_s26, %s1504_s26, %s1505_s27  }
 0x180 PF: > { %p1267_p4 = scmp.ge.s32.totalorder %s1494_s17, 2  ;;  %s975_s4 = sand.u32 1, %s1474_s12  }
 0x181   : > { %p1856_p8 = scmp.ne.s32.totalorder %s1851_s23, 0  ;;  %s976_s5 = scalar_lea.sflag [#allocation4], %s975_s4 }
 0x183   : > { %p1260_p3 = pnand %p1267_p4, %p1856_p8 }
 0x185   : > { %p1261_p10 = pneg %p1260_p3 }
 0x187   : > { %1469 = dma.done.wait (%p1261_p10), %s976_s5, 3840  }
 0x188   : > { %1471 = vsyncadd (%p1261_p10), %s976_s5, 4294963456  ;;  %s20_s17 = sadd.s32 1, %s1494_s17   ;;  %s1857_s12 = smov %s1478_s13 }
 0x189   : > { %p17_p2 = scmp.ge.s32.totalorder %s20_s17, 6   ;;  %s1858_s13 = smov %s1482_s14 }
 0x18a   : > { %s1859_s14 = smov %s1617_s18  ;;  %s1860_s15 = smov %s1490_s16 }
 0x18b   : > { %s1861_s16 = smov %s1863_s28  ;;  %19 = sbr.rel (!%p17_p2) target bundleno = 7 (0x7), region = 85 }
 0x190   :  { %981 = vsyncpa [#allocation3], 1 }
 0x191   :  { %983 = vsyncpa [#allocation3 + $0x1], 1 }
 0x192   :  { %984 = vsyncpa [#allocation6], 1 }
 0x193   :  { %985 = vsyncpa [#allocation4], 1 }
 0x194   :  { %987 = vsyncpa [#allocation4 + $0x1], 1 }

</bundles_post_ra>
